<compile_context>
chip_gen: v6e
topology: v6e:2x2x1
jax: 0.10.0
libtpu: 0.0.40
codegen_flags: <defaults>
</compile_context>

<pallas_src>
import functools

import jax
import jax.numpy as jnp
import numpy as np
from jax.experimental import pallas as pl
from jax.experimental.pallas import tpu as pltpu


def _round_up(x: int, m: int) -> int:
    return ((x + m - 1) // m) * m


def _power_spectrum_kernel(frames_ref, basis_ref, out_ref, *, n_freq_pad):
    # frames_ref: (tm, n_fft_pad) ; basis_ref: (n_fft_pad, 2*n_freq_pad)
    # out_ref:    (tm, n_freq_pad)
    spec = jnp.dot(frames_ref[...], basis_ref[...],
                   preferred_element_type=jnp.float32)      # (tm, 2*n_freq_pad)
    re = spec[:, :n_freq_pad]
    im = spec[:, n_freq_pad:]
    power = jnp.maximum(re * re + im * im, 1e-10)
    out_ref[...] = jnp.sqrt(power).astype(out_ref.dtype)


def _hann_window(win_length: int) -> np.ndarray:
    # torch.hann_window default is periodic=True.
    n = np.arange(win_length, dtype=np.float64)
    return 0.5 - 0.5 * np.cos(2.0 * np.pi * n / win_length)


def _hamming_window(win_length: int) -> np.ndarray:
    # torch.hamming_window default is periodic=True, alpha=0.54, beta=0.46.
    n = np.arange(win_length, dtype=np.float64)
    return 0.54 - 0.46 * np.cos(2.0 * np.pi * n / win_length)


class PowerSpectrumPallas:
    """Power spectrum from raw wave; mirrors the PyTorch PowerSpectrum module."""

    def __init__(self, win_length, hop_length, n_fft, window_type="HANNING",
                 center=True, normalized=False, onesided=True,
                 compute_dtype=jnp.float32):
        self.win_length = win_length
        self.hop_length = hop_length
        self.n_fft = n_fft
        self.center = center
        self.normalized = normalized
        self.onesided = onesided
        self.compute_dtype = compute_dtype

        if window_type == "HANNING":
            win = _hann_window(win_length)
        elif window_type == "HAMMING":
            win = _hamming_window(win_length)
        else:
            raise ValueError(f"{window_type} window is not implemented")

        # torch.stft zero-pads a short window to n_fft, centered.
        if win_length < n_fft:
            left = (n_fft - win_length) // 2
            win = np.pad(win, (left, n_fft - win_length - left))
        if normalized:
            win = win / np.sqrt(float(n_fft))

        # Real-DFT bases with the window folded in:
        #   re[k] = sum_n (x[n]*w[n]) cos(2*pi*k*n/N)
        #   im[k] = -sum_n (x[n]*w[n]) sin(2*pi*k*n/N)
        n_freq = (n_fft // 2 + 1) if onesided else n_fft
        self.n_freq = n_freq

        # Pad K (n_fft) and the output lane dim (n_freq) to multiples of 128 so
        # the MXU matmul is fully populated and the output store is lane-dense.
        self.n_fft_pad = _round_up(n_fft, 128)
        self.n_freq_pad = _round_up(n_freq, 128)

        n_idx = np.arange(n_fft)[:, None].astype(np.float64)
        k_idx = np.arange(n_freq)[None, :].astype(np.float64)
        ang = 2.0 * np.pi * n_idx * k_idx / n_fft
        cos_b = np.cos(ang) * win[:, None]          # (n_fft, n_freq)
        sin_b = -np.sin(ang) * win[:, None]         # (n_fft, n_freq)

        basis = np.zeros((self.n_fft_pad, 2 * self.n_freq_pad), dtype=np.float64)
        basis[:n_fft, :n_freq] = cos_b
        basis[:n_fft, self.n_freq_pad:self.n_freq_pad + n_freq] = sin_b
        self.basis = jnp.asarray(basis, dtype=compute_dtype)  # (n_fft_pad, 2*n_freq_pad)

    def _frames(self, x):
        B, T = x.shape
        if self.center:
            pad = self.n_fft // 2
            x = jnp.pad(x, ((0, 0), (pad, pad)), mode="reflect")
        T_pad = x.shape[1]
        n_frames = 1 + (T_pad - self.n_fft) // self.hop_length
        idx = (jnp.arange(n_frames)[:, None] * self.hop_length
               + jnp.arange(self.n_fft)[None, :])                   # (n_frames, n_fft)
        frames = x[:, idx]                                          # (B, n_frames, n_fft)
        return frames.reshape(B * n_frames, self.n_fft), n_frames

    def __call__(self, x, x_length=None, *, tm=256):
        x = x.astype(jnp.float32)
        B = x.shape[0]
        frames, n_frames = self._frames(x)                          # (M, n_fft)
        M = frames.shape[0]

        # Row tile: big for MXU occupancy, clamped to the (8-aligned) problem size.
        tm_eff = min(tm, _round_up(M, 8))
        tm_eff = _round_up(tm_eff, 8)
        M_pad = _round_up(M, tm_eff)

        n_fft, n_fft_pad = self.n_fft, self.n_fft_pad
        n_freq, n_freq_pad = self.n_freq, self.n_freq_pad

        # Zero-pad rows to M_pad and K to n_fft_pad (free numerically).
        frames = jnp.pad(frames, ((0, M_pad - M), (0, n_fft_pad - n_fft)))
        frames = frames.astype(self.compute_dtype)

        grid = (M_pad // tm_eff,)
        itemsize = jnp.dtype(self.compute_dtype).itemsize

        # VMEM budget: double-buffered frame tile + basis + output tile.
        vmem_needed = 2 * itemsize * (tm_eff * n_fft_pad + n_fft_pad * 2 * n_freq_pad) \
            + 2 * 4 * tm_eff * n_freq_pad
        vmem_limit = int(min(max(2 * vmem_needed + (4 << 20), 32 << 20), 64 << 20))

        cost = pl.CostEstimate(
            flops=2 * M_pad * n_fft_pad * 2 * n_freq_pad + 3 * M_pad * n_freq_pad,
            transcendentals=M_pad * n_freq_pad,
            bytes_accessed=(M_pad * n_fft_pad + n_fft_pad * 2 * n_freq_pad) * itemsize
            + M_pad * n_freq_pad * 4,
        )

        kernel = functools.partial(_power_spectrum_kernel, n_freq_pad=n_freq_pad)

        out = pl.pallas_call(
            kernel,
            out_shape=jax.ShapeDtypeStruct((M_pad, n_freq_pad), jnp.float32),
            grid_spec=pltpu.PrefetchScalarGridSpec(
                num_scalar_prefetch=0,
                grid=grid,
                in_specs=[
                    pl.BlockSpec((tm_eff, n_fft_pad), lambda i: (i, 0)),
                    pl.BlockSpec((n_fft_pad, 2 * n_freq_pad), lambda i: (0, 0)),
                ],
                out_specs=pl.BlockSpec((tm_eff, n_freq_pad), lambda i: (i, 0)),
            ),
            compiler_params=pltpu.CompilerParams(
                dimension_semantics=("parallel",),
                vmem_limit_bytes=vmem_limit),
            cost_estimate=cost,
        )(frames, self.basis)

        out = out[:M, :n_freq].reshape(B, n_frames, n_freq)         # (B, T', N)

        out_length = None
        if x_length is not None:
            xl = x_length.astype(jnp.int32)
            if self.center:
                xl = xl + 2 * (self.n_fft // 2)
            out_length = (xl - self.n_fft) // self.hop_length + 1
        return out, out_length


def _reference(module: PowerSpectrumPallas, x):
    """Pure-JAX reference (rfft) for a sanity check."""
    frames, n_frames = module._frames(x.astype(jnp.float32))
    # Re-derive the (windowed, unpadded) frame matrix independently of the bases.
    win = np.zeros(module.n_fft, dtype=np.float64)
    if module.window_is_hann:
        w = _hann_window(module.win_length)
    else:
        w = _hamming_window(module.win_length)
    left = (module.n_fft - module.win_length) // 2
    win[left:left + module.win_length] = w
    if module.normalized:
        win = win / np.sqrt(float(module.n_fft))
    frames = frames * jnp.asarray(win, jnp.float32)[None, :]
    if module.onesided:
        spec = jnp.fft.rfft(frames, n=module.n_fft, axis=-1)
    else:
        spec = jnp.fft.fft(frames, n=module.n_fft, axis=-1)
    mag = jnp.sqrt(jnp.maximum(spec.real ** 2 + spec.imag ** 2, 1e-10))
    return mag.reshape(x.shape[0], n_frames, module.n_freq)


if __name__ == "__main__":
    key = jax.random.PRNGKey(0)
    B, T = 2, 128
    win_length, hop_length, n_fft = 16, 4, 16

    x = jax.random.normal(key, (B, T), dtype=jnp.float32)
    x_length = jnp.array([T, 100], dtype=jnp.int32)

    module = PowerSpectrumPallas(win_length=win_length, hop_length=hop_length,
                                 n_fft=n_fft, window_type="HANNING",
                                 center=True, normalized=False, onesided=True)
    module.window_is_hann = True  # used only by the reference

    out, out_length = module(x, x_length)
    out = jax.block_until_ready(out)
    out_length = jax.block_until_ready(out_length)

    ref = _reference(module, x)
    assert out.shape == ref.shape, (out.shape, ref.shape)
    assert bool(jnp.allclose(out, ref, rtol=1e-3, atol=1e-3)), "mismatch vs reference"

    print("KERNEL_OK")
</pallas_src>

<mosaic_0001>
module attributes {stable_mosaic.version = 11 : i64} {
  func.func @_power_spectrum_kernel(%arg0: i32, %arg1: memref<72x128xf32, #tpu.memory_space<vmem>>, %arg2: memref<128x256xf32, #tpu.memory_space<vmem>>, %arg3: memref<72x128xf32, #tpu.memory_space<vmem>>) attributes {dimension_semantics = [#tpu.dimension_semantics<parallel>], iteration_bounds = array<i64: 1>, scalar_prefetch = 0 : i64, scratch_operands = 0 : i64, tpu.core_type = #tpu.core_type<tc>, window_params = [{transform_indices = @transform_0, window_bounds = array<i64: 72, 128>}, {pipeline_mode = #tpu.pipeline_mode<synchronous>, transform_indices = @transform_1, window_bounds = array<i64: 128, 256>}, {transform_indices = @transform_2, window_bounds = array<i64: 72, 128>}]} {
    %c0 = arith.constant 0 : index
    %c0_0 = arith.constant 0 : index
    %0 = vector.load %arg1[%c0, %c0_0] : memref<72x128xf32, #tpu.memory_space<vmem>>, vector<72x128xf32>
    %c0_1 = arith.constant 0 : index
    %c0_2 = arith.constant 0 : index
    %1 = vector.load %arg2[%c0_1, %c0_2] : memref<128x256xf32, #tpu.memory_space<vmem>>, vector<128x256xf32>
    %cst = arith.constant dense<0.000000e+00> : vector<72x256xf32>
    %2 = tpu.matmul %0, %1, %cst {dimension_numbers = #tpu.dot_dimension_numbers<[1], [0], [0], [1], [0, 0, 1, 1], [], []>} : vector<72x128xf32>, vector<128x256xf32>, vector<72x256xf32> -> vector<72x256xf32>
    %3 = vector.extract_strided_slice %2 {offsets = [0, 0], sizes = [72, 128], strides = [1, 1]} : vector<72x256xf32> to vector<72x128xf32>
    %4 = vector.extract_strided_slice %2 {offsets = [0, 128], sizes = [72, 128], strides = [1, 1]} : vector<72x256xf32> to vector<72x128xf32>
    %5 = arith.mulf %3, %3 : vector<72x128xf32>
    %6 = arith.mulf %4, %4 : vector<72x128xf32>
    %7 = arith.addf %5, %6 : vector<72x128xf32>
    %cst_3 = arith.constant 1.000000e-10 : f32
    %8 = vector.broadcast %cst_3 : f32 to vector<72x128xf32>
    %9 = arith.maximumf %7, %8 : vector<72x128xf32>
    %10 = math.sqrt %9 : vector<72x128xf32>
    %c0_4 = arith.constant 0 : index
    %c0_5 = arith.constant 0 : index
    %11 = vector.load %arg3[%c0_4, %c0_5] : memref<72x128xf32, #tpu.memory_space<vmem>>, vector<72x128xf32>
    tpu.vector_store %arg3[%c0_4, %c0_5], %10 {strides = array<i32>} : memref<72x128xf32, #tpu.memory_space<vmem>>, vector<72x128xf32>,
    return
  }
  func.func @transform_0(%arg0: i32) -> (i32, i32) {
    %c0_i32 = arith.constant 0 : i32
    %c0_i32_0 = arith.constant 0 : i32
    return %arg0, %c0_i32 : i32, i32
  }
  func.func @transform_1(%arg0: i32) -> (i32, i32) {
    %c0_i32 = arith.constant 0 : i32
    %c0_i32_0 = arith.constant 0 : i32
    %c0_i32_1 = arith.constant 0 : i32
    return %c0_i32, %c0_i32_0 : i32, i32
  }
  func.func @transform_2(%arg0: i32) -> (i32, i32) {
    %c0_i32 = arith.constant 0 : i32
    %c0_i32_0 = arith.constant 0 : i32
    return %arg0, %c0_i32 : i32, i32
  }
}

</mosaic_0001>

<bundles_post_ra>
// kernel: tpu_custom_call.1
= control target key start
LH: loop header
LB: loop body
LE: loop exit
PB: predicated region body
PF: predicated region fallthrough
CT: control target
= control target key end

     0   :  { %7 = vsyncpa [#allocation3], 0  ;;  %s529_s0 = inlined_call_operand.hbm [shape: f32[72,128], index: 0, kind: input, shape index: {}]   ;;  %s530_s1 = inlined_call_operand.hbm [shape: f32[128,256], index: 1, kind: input, shape index: {}]   ;;  %s531_s2 = inlined_call_operand.hbm [shape: f32[72,128], index: 2, kind: output, shape index: {}]  }
   0x1   :  { %8 = vsyncpa [#allocation6], 0 }
   0x2   :  { %9 = vsyncpa [#allocation4], 0  ;;  %s450_s9 = smov [#allocation2]  }
   0x3   :  { %s15_s10 = sshll.u32 %s450_s9, 4  ;;  %s16_s10 = int_to_ptr.vmem [resolvable:$true] %s15_s10 }
   0x4   :  { %s392_s11 = scalar_lea.vmem %s16_s10, 1152  ;;  %p397_p1 = scmp.lt.s32.totalorder %s16_s10, %s16_s10 }
   0x5   :  { %p393_p0 = scmp.ne.s32.totalorder %s16_s10, %s392_s11  ;;  %p398_p2 = scmp.lt.s32.totalorder %s392_s11, %s392_s11 }
   0x7   :  { %p399_p3 = por %p398_p2, %p397_p1 }
   0x9   :  { %p400_p4 = pnand %p399_p3, %p393_p0 }
   0xb   :  { %403 = shalt.err (!%p400_p4)
}
   0xc   :  { %s451_s12 = smov 128   ;;  %s452_s13 = smov 8  }
   0xd   :  { %21 = dma.hbm_to_vmem [thread:$0]  %s529_s0, 1152, %s16_s10, [#allocation3], %s451_s12, %s451_s12, %s452_s13  }
   0xe   :  { %s453_s16 = smov [#allocation5]  }
   0xf   :  { %s27_s17 = sshll.u32 %s453_s16, 4  ;;  %s28_s17 = int_to_ptr.vmem [resolvable:$true] %s27_s17 }
  0x10   :  { %s412_s18 = scalar_lea.vmem %s28_s17, 4096  ;;  %p417_p6 = scmp.lt.s32.totalorder %s28_s17, %s28_s17 }
  0x11   :  { %p413_p5 = scmp.ne.s32.totalorder %s28_s17, %s412_s18  ;;  %p418_p7 = scmp.lt.s32.totalorder %s412_s18, %s412_s18 }
  0x13   :  { %p419_p8 = por %p418_p7, %p417_p6 }
  0x15   :  { %p420_p9 = pnand %p419_p8, %p413_p5 }
  0x17   :  { %423 = shalt.err (!%p420_p9)
}
  0x18   :  { %s454_s19 = smov 256   ;;  %s455_s20 = smov 16  }
  0x19   :  { %33 = dma.hbm_to_vmem [thread:$0]  %s530_s1, 4096, %s28_s17, [#allocation6], %s454_s19, %s454_s19, %s455_s20  }
  0x1a   :  { %444 = dma.done.wait [#allocation3], 1152  }
  0x1b   :  { %445 = vsyncadd [#allocation3], 4294966144 }
  0x1c   :  { %446 = dma.done.wait [#allocation6], 4096  }
  0x1d   :  { %447 = vsyncadd [#allocation6], 4294963200  ;;  %v456_v0 = vmov 0.0   ;;  %v80_v1 = vld [vmem:[#allocation5 + $0xf8] sm:$0xff]  ;;  %v79_v2 = vld [vmem:[#allocation5 + $0xf0] sm:$0xff]  ;;  %s457_s0 = smov [#allocation7]  }
  0x1e   :  { %145 = vmatprep.mubr.f32.mxu0 %v456_v0  ;;  %175 = vmatprep.mubr.f32.mxu1 %v456_v0  ;;  %v78_v3 = vld [vmem:[#allocation5 + $0xe8] sm:$0xff]  ;;  %v77_v4 = vld [vmem:[#allocation5 + $0xe0] sm:$0xff]  ;;  %v76_v5 = vld [vmem:[#allocation5 + $0xd8] sm:$0xff]  ;;  %s313_s1 = sshll.u32 %s457_s0, 4  ;;  %s314_s1 = int_to_ptr.vmem [resolvable:$true] %s313_s1 }
  0x1f   :  { %81 = vmatprep.subr.mxu0 %v80_v1  ;;  %326 = vmatprep.subr.mxu1 %v80_v1  ;;  %v75_v6 = vld [vmem:[#allocation5 + $0xd0] sm:$0xff]  ;;  %v74_v7 = vld [vmem:[#allocation5 + $0xc8] sm:$0xff]  ;;  %v73_v8 = vld [vmem:[#allocation5 + $0xc0] sm:$0xff]  ;;  %s424_s23 = scalar_lea.vmem %s314_s1, 1152  ;;  %p429_p11 = scmp.lt.s32.totalorder %s314_s1, %s314_s1 }
  0x20   :  { %82 = vmatpush1.msra.mxu0 %v79_v2  ;;  %342 = vmatpush1.msra.mxu1 %v79_v2  ;;  %v72_v9 = vld [vmem:[#allocation5 + $0xb8] sm:$0xff]  ;;  %v71_v10 = vld [vmem:[#allocation5 + $0xb0] sm:$0xff]  ;;  %v70_v11 = vld [vmem:[#allocation5 + $0xa8] sm:$0xff]  ;;  %p425_p10 = scmp.ne.s32.totalorder %s314_s1, %s424_s23  ;;  %p430_p12 = scmp.lt.s32.totalorder %s424_s23, %s424_s23 }
  0x21   :  { %83 = vmatprep.subr.mxu0 %v78_v3  ;;  %327 = vmatprep.subr.mxu1 %v78_v3  ;;  %v69_v12 = vld [vmem:[#allocation5 + $0xa0] sm:$0xff]  ;;  %v68_v13 = vld [vmem:[#allocation5 + $0x98] sm:$0xff]  ;;  %v67_v14 = vld [vmem:[#allocation5 + $0x90] sm:$0xff] }
  0x22   :  { %84 = vmatpush1.msra.mxu0 %v77_v4  ;;  %343 = vmatpush1.msra.mxu1 %v77_v4  ;;  %v66_v15 = vld [vmem:[#allocation5 + $0x88] sm:$0xff]  ;;  %v65_v16 = vld [vmem:[#allocation5 + $0x80] sm:$0xff]  ;;  %v64_v17 = vld [vmem:[#allocation5 + $0x78] sm:$0xff]  ;;  %p431_p13 = por %p430_p12, %p429_p11 }
  0x23   :  { %85 = vmatprep.subr.mxu0 %v76_v5  ;;  %328 = vmatprep.subr.mxu1 %v76_v5  ;;  %v63_v18 = vld [vmem:[#allocation5 + $0x70] sm:$0xff]  ;;  %v62_v19 = vld [vmem:[#allocation5 + $0x68] sm:$0xff]  ;;  %v61_v20 = vld [vmem:[#allocation5 + $0x60] sm:$0xff] }
  0x24   :  { %86 = vmatpush1.msra.mxu0 %v75_v6  ;;  %344 = vmatpush1.msra.mxu1 %v75_v6  ;;  %v60_v21 = vld [vmem:[#allocation5 + $0x58] sm:$0xff]  ;;  %v59_v22 = vld [vmem:[#allocation5 + $0x50] sm:$0xff]  ;;  %v58_v23 = vld [vmem:[#allocation5 + $0x48] sm:$0xff]  ;;  %p432_p0 = pnand %p431_p13, %p425_p10 }
  0x25   :  { %87 = vmatprep.subr.mxu0 %v74_v7  ;;  %329 = vmatprep.subr.mxu1 %v74_v7  ;;  %v57_v24 = vld [vmem:[#allocation5 + $0x40] sm:$0xff]  ;;  %v56_v25 = vld [vmem:[#allocation5 + $0x38] sm:$0xff]  ;;  %v55_v26 = vld [vmem:[#allocation5 + $0x30] sm:$0xff] }
  0x26   :  { %88 = vmatpush1.msra.mxu0 %v73_v8  ;;  %345 = vmatpush1.msra.mxu1 %v73_v8  ;;  %v54_v27 = vld [vmem:[#allocation5 + $0x28] sm:$0xff]  ;;  %v53_v28 = vld [vmem:[#allocation5 + $0x20] sm:$0xff]  ;;  %v52_v29 = vld [vmem:[#allocation5 + $0x18] sm:$0xff] }
  0x27   :  { %89 = vmatprep.subr.mxu0 %v72_v9  ;;  %330 = vmatprep.subr.mxu1 %v72_v9  ;;  %v51_v30 = vld [vmem:[#allocation5 + $0x10] sm:$0xff]  ;;  %v50_v31 = vld [vmem:[#allocation5 + $0x8] sm:$0xff]  ;;  %v49_v32 = vld [vmem:[#allocation5] sm:$0xff] }
  0x28   :  { %90 = vmatpush1.msra.mxu0 %v71_v10  ;;  %346 = vmatpush1.msra.mxu1 %v71_v10  ;;  %v40_v33 = vld [vmem:[#allocation2] sm:$0xff]  ;;  %v45_v34 = vld [vmem:[#allocation2 + $0x28] sm:$0xff]  ;;  %v46_v36 = vld [vmem:[#allocation2 + $0x30] sm:$0xff] }
  0x29   :  { %91 = vmatprep.subr.mxu0 %v70_v11  ;;  %331 = vmatprep.subr.mxu1 %v70_v11  ;;  %v41_v35 = vld [vmem:[#allocation2 + $0x8] sm:$0xff]  ;;  %v42_v37 = vld [vmem:[#allocation2 + $0x10] sm:$0xff]  ;;  %v47_v38 = vld [vmem:[#allocation2 + $0x38] sm:$0xff] }
  0x2a   :  { %92 = vmatpush1.msra.mxu0 %v69_v12  ;;  %347 = vmatpush1.msra.mxu1 %v69_v12  ;;  %v43_v39 = vld [vmem:[#allocation2 + $0x18] sm:$0xff]  ;;  %v48_v40 = vld [vmem:[#allocation2 + $0x40] sm:$0xff] }
  0x2b   :  { %93 = vmatprep.subr.mxu0 %v68_v13  ;;  %332 = vmatprep.subr.mxu1 %v68_v13  ;;  %v44_v41 = vld [vmem:[#allocation2 + $0x20] sm:$0xff] }
  0x2c   :  { %94 = vmatpush1.msra.mxu0 %v67_v14  ;;  %348 = vmatpush1.msra.mxu1 %v67_v14 }
  0x2d   :  { %95 = vmatprep.subr.mxu0 %v66_v15  ;;  %333 = vmatprep.subr.mxu1 %v66_v15 }
  0x2e   :  { %96 = vmatpush1.msra.mxu0 %v65_v16  ;;  %349 = vmatpush1.msra.mxu1 %v65_v16 }
  0x2f   :  { %97 = vmatprep.subr.mxu0 %v64_v17  ;;  %334 = vmatprep.subr.mxu1 %v64_v17 }
  0x30   :  { %98 = vmatpush1.msra.mxu0 %v63_v18  ;;  %350 = vmatpush1.msra.mxu1 %v63_v18 }
  0x31   :  { %99 = vmatprep.subr.mxu0 %v62_v19  ;;  %335 = vmatprep.subr.mxu1 %v62_v19 }
  0x32   :  { %100 = vmatpush1.msra.mxu0 %v61_v20  ;;  %351 = vmatpush1.msra.mxu1 %v61_v20 }
  0x33   :  { %101 = vmatprep.subr.mxu0 %v60_v21  ;;  %336 = vmatprep.subr.mxu1 %v60_v21 }
  0x34   :  { %102 = vmatpush1.msra.mxu0 %v59_v22  ;;  %352 = vmatpush1.msra.mxu1 %v59_v22 }
  0x35   :  { %103 = vmatprep.subr.mxu0 %v58_v23  ;;  %337 = vmatprep.subr.mxu1 %v58_v23 }
  0x36   :  { %104 = vmatpush1.msra.mxu0 %v57_v24  ;;  %353 = vmatpush1.msra.mxu1 %v57_v24 }
  0x37   :  { %105 = vmatprep.subr.mxu0 %v56_v25  ;;  %338 = vmatprep.subr.mxu1 %v56_v25 }
  0x38   :  { %106 = vmatpush1.msra.mxu0 %v55_v26  ;;  %354 = vmatpush1.msra.mxu1 %v55_v26 }
  0x39   :  { %107 = vmatprep.subr.mxu0 %v54_v27  ;;  %339 = vmatprep.subr.mxu1 %v54_v27 }
  0x3a   :  { %108 = vmatpush1.msra.mxu0 %v53_v28  ;;  %355 = vmatpush1.msra.mxu1 %v53_v28 }
  0x3b   :  { %109 = vmatprep.subr.mxu0 %v52_v29  ;;  %340 = vmatprep.subr.mxu1 %v52_v29 }
  0x3c   :  { %110 = vmatpush1.msra.mxu0 %v51_v30  ;;  %356 = vmatpush1.msra.mxu1 %v51_v30 }
  0x3d   :  { %111 = vmatprep.subr.mxu0 %v50_v31  ;;  %341 = vmatprep.subr.mxu1 %v50_v31 }
  0x3e   :  { %112 = vmatpush1.msra.mxu0 %v49_v32  ;;  %357 = vmatpush1.msra.mxu1 %v49_v32 }
  0x3f   :  { %146 = vmatmul.mubr.f32.vlgmr.msra.gmra.mxu0 %v40_v33  ;;  %176 = vmatmul.mubr.f32.vlgmr.msra.gmra.mxu1 %v45_v34 }
  0x40   :  { %151 = vmatprep.mubr.f32.mxu0 %v456_v0  ;;  %181 = vmatprep.mubr.f32.mxu1 %v456_v0 }
  0x43   :  { %152 = vmatmul.mubr.f32.gmra.mxu0 %v41_v35  ;;  %182 = vmatmul.mubr.f32.gmra.mxu1 %v46_v36 }
  0x44   :  { %157 = vmatprep.mubr.f32.mxu0 %v456_v0  ;;  %187 = vmatprep.mubr.f32.mxu1 %v456_v0 }
  0x47   :  { %158 = vmatmul.mubr.f32.gmra.mxu0 %v42_v37  ;;  %188 = vmatmul.mubr.f32.gmra.mxu1 %v47_v38 }
  0x48   :  { %163 = vmatprep.mubr.f32.mxu0 %v456_v0  ;;  %193 = vmatprep.mubr.f32.mxu1 %v456_v0 }
  0x4b   :  { %164 = vmatmul.mubr.f32.gmra.mxu0 %v43_v39  ;;  %194 = vmatmul.mubr.f32.gmra.mxu1 %v48_v40 }
  0x4c   :  { %169 = vmatprep.mubr.f32.mxu0 %v456_v0 }
  0x4f   :  { %170 = vmatmul.mubr.f32.gmra.mxu0 %v44_v41 }
  0xff   :  { %v147_v42 = vpop.f32.mrf.mxu0  ;;  %v177_v43 = vpop.f32.mrf.mxu1 }
 0x100   :  { %v205_v44 = vmul.f32 %v177_v43, %v177_v43  ;;  %v200_v47 = vmul.f32 %v147_v42, %v147_v42 }
 0x101   :  { %v149_v45 = vpop.f32.mrf.mxu0  ;;  %v179_v46 = vpop.f32.mrf.mxu1 }
 0x102   :  { %v209_v48 = vmul.f32 %v149_v45, %v149_v45  ;;  %v214_v49 = vmul.f32 %v179_v46, %v179_v46 }
 0x103   :  { %v153_v50 = vpop.f32.mrf.mxu0  ;;  %v183_v51 = vpop.f32.mrf.mxu1 }
 0x104   :  { %v218_v52 = vadd.f32 %v209_v48, %v200_v47  ;;  %v223_v53 = vadd.f32 %v214_v49, %v205_v44  ;;  %v206_v54 = vmul.f32 %v183_v51, %v183_v51  ;;  %v201_v63 = vmul.f32 %v153_v50, %v153_v50 }
 0x105   :  { %v155_v55 = vpop.f32.mrf.mxu0  ;;  %v185_v56 = vpop.f32.mrf.mxu1 }
 0x106   :  { %v227_v57 = vmax.f32 %v218_v52, 1e-10  ;;  %v232_v58 = vmax.f32 %v223_v53, 1e-10  ;;  %v210_v59 = vmul.f32 %v155_v55, %v155_v55  ;;  %v215_v60 = vmul.f32 %v185_v56, %v185_v56 }
 0x107   :  { %v159_v61 = vpop.f32.mrf.mxu0  ;;  %v189_v62 = vpop.f32.mrf.mxu1 }
 0x108   :  { %366 = vrsqrt.f32 %v227_v57  ;;  %v219_v2 = vadd.f32 %v210_v59, %v201_v63  ;;  %v224_v3 = vadd.f32 %v215_v60, %v206_v54  ;;  %v207_v4 = vmul.f32 %v189_v62, %v189_v62 }
 0x109   :  { %368 = vrsqrt.f32 %v232_v58  ;;  %v161_v0 = vpop.f32.mrf.mxu0  ;;  %v191_v1 = vpop.f32.mrf.mxu1  ;;  %v202_v5 = vmul.f32 %v159_v61, %v159_v61  ;;  %vm238_vm0 = vcmp.eq.f32.partialorder %v227_v57, inf  ;;  %vm240_vm1 = vcmp.eq.f32.partialorder %v227_v57, 0.0 }
 0x10a   :  { %v211_v6 = vmul.f32 %v161_v0, %v161_v0  ;;  %v216_v7 = vmul.f32 %v191_v1, %v191_v1  ;;  %v228_v10 = vmax.f32 %v219_v2, 1e-10  ;;  %v233_v11 = vmax.f32 %v224_v3, 1e-10 }
 0x10b   :  { %v165_v8 = vpop.f32.mrf.mxu0  ;;  %v195_v9 = vpop.f32.mrf.mxu1  ;;  %v241_v33 = vand.u32 2147483648, %v227_v57  ;;  %vm273_vm2 = vcmp.eq.f32.partialorder %v232_v58, inf  ;;  %v276_v37 = vand.u32 2147483648, %v232_v58  ;;  %vm275_vm3 = vcmp.eq.f32.partialorder %v232_v58, 0.0 }
 0x10c   :  { %v220_v12 = vadd.f32 %v211_v6, %v202_v5  ;;  %v225_v13 = vadd.f32 %v216_v7, %v207_v4  ;;  %370 = vrsqrt.f32 %v228_v10  ;;  %v208_v16 = vmul.f32 %v195_v9, %v195_v9 }
 0x10d   :  { %v167_v14 = vpop.f32.mrf.mxu0  ;;  %v197_v15 = vpop.f32.mrf.mxu1  ;;  %372 = vrsqrt.f32 %v233_v11  ;;  %v203_v23 = vmul.f32 %v165_v8, %v165_v8  ;;  %vm245_vm4 = vcmp.eq.f32.partialorder %v228_v10, inf  ;;  %v248_v45 = vand.u32 2147483648, %v228_v10 }
 0x10e   :  { %v491_v18 = vmax.f32 %v220_v12, 1e-10  ;;  %v493_v19 = vmax.f32 %v225_v13, 1e-10  ;;  %v212_v20 = vmul.f32 %v167_v14, %v167_v14  ;;  %v217_v21 = vmul.f32 %v197_v15, %v197_v15 }
 0x10f   :  { %v171_v17 = vpop.f32.mrf.mxu0  ;;  %vm247_vm5 = vcmp.eq.f32.partialorder %v228_v10, 0.0  ;;  %vm280_vm6 = vcmp.eq.f32.partialorder %v233_v11, inf  ;;  %v283_v48 = vand.u32 2147483648, %v233_v11  ;;  %vm282_vm7 = vcmp.eq.f32.partialorder %v233_v11, 0.0 }
 0x110   :  { %374 = vrsqrt.f32 %v491_v18  ;;  %v221_v24 = vadd.f32 %v212_v20, %v203_v23  ;;  %v226_v25 = vadd.f32 %v217_v21, %v208_v16  ;;  %v204_v28 = vmul.f32 %v171_v17, %v171_v17 }
 0x111   :  { %v173_v22 = vpop.f32.mrf.mxu0  ;;  %376 = vrsqrt.f32 %v493_v19  ;;  %vm252_vm8 = vcmp.eq.f32.partialorder %v491_v18, inf  ;;  %v255_v55 = vand.u32 2147483648, %v491_v18  ;;  %vm254_vm9 = vcmp.eq.f32.partialorder %v491_v18, 0.0 }
 0x112   :  { %v213_v26 = vmul.f32 %v173_v22, %v173_v22  ;;  %v497_v31 = vmax.f32 %v221_v24, 1e-10  ;;  %v499_v32 = vmax.f32 %v226_v25, 1e-10  ;;  %vm287_vm10 = vcmp.eq.f32.partialorder %v493_v19, inf }
 0x113   :  { %vm289_vm11 = vcmp.eq.f32.partialorder %v493_v19, 0.0 }
 0x114   :  { %v222_v35 = vadd.f32 %v213_v26, %v204_v28  ;;  %378 = vrsqrt.f32 %v497_v31  ;;  %vm259_vm12 = vcmp.eq.f32.partialorder %v497_v31, inf  ;;  %v262_v1 = vand.u32 2147483648, %v497_v31 }
 0x115   :  { %v367_v27 = vpop.eup %366  ;;  %380 = vrsqrt.f32 %v499_v32  ;;  %vm261_vm13 = vcmp.eq.f32.partialorder %v497_v31, 0.0  ;;  %vm294_vm14 = vcmp.eq.f32.partialorder %v499_v32, inf  ;;  %v297_v4 = vand.u32 2147483648, %v499_v32 }
 0x116   :  { %v369_v29 = vpop.eup %368  ;;  %v237_v30 = vmul.f32 %v367_v27, %v227_v57  ;;  %v231_v42 = vmax.f32 %v222_v35, 1e-10  ;;  %vm296_vm15 = vcmp.eq.f32.partialorder %v499_v32, 0.0 }
 0x117   :  { %v272_v34 = vmul.f32 %v369_v29, %v232_v58 }
 0x118   :  { %v239_v36 = vsel %vm238_vm0, %v227_v57, %v237_v30  ;;  %382 = vrsqrt.f32 %v231_v42  ;;  %vm266_vm0 = vcmp.eq.f32.partialorder %v231_v42, inf }
 0x119   :  { %v242_v38 = vsel %vm240_vm1, %v241_v33, %v239_v36  ;;  %v274_v39 = vsel %vm273_vm2, %v232_v58, %v272_v34  ;;  %v371_v41 = vpop.eup %370  ;;  %v290_v58 = vand.u32 2147483648, %v493_v19  ;;  %vm268_vm1 = vcmp.eq.f32.partialorder %v231_v42, 0.0 }
 0x11a   :  { %299 = vst [vmem:[#allocation7] sm:$0xff] %v242_v38  ;;  %v277_v40 = vsel %vm275_vm3, %v276_v37, %v274_v39  ;;  %v373_v43 = vpop.eup %372  ;;  %v244_v44 = vmul.f32 %v371_v41, %v228_v10 }
 0x11b   :  { %304 = vst [vmem:[#allocation7 + $0x28] sm:$0xff] %v277_v40  ;;  %v279_v46 = vmul.f32 %v373_v43, %v233_v11 }
 0x11c   :  { %v246_v47 = vsel %vm245_vm4, %v228_v10, %v244_v44  ;;  %v269_v10 = vand.u32 2147483648, %v231_v42 }
 0x11d   :  { %v375_v49 = vpop.eup %374  ;;  %v249_v50 = vsel %vm247_vm5, %v248_v45, %v246_v47  ;;  %v281_v51 = vsel %vm280_vm6, %v233_v11, %v279_v46 }
 0x11e   :  { %v377_v52 = vpop.eup %376  ;;  %300 = vst [vmem:[#allocation7 + $0x8] sm:$0xff] %v249_v50  ;;  %v284_v53 = vsel %vm282_vm7, %v283_v48, %v281_v51  ;;  %v251_v54 = vmul.f32 %v375_v49, %v491_v18 }
 0x11f   :  { %305 = vst [vmem:[#allocation7 + $0x30] sm:$0xff] %v284_v53  ;;  %v286_v56 = vmul.f32 %v377_v52, %v493_v19 }
 0x120   :  { %v253_v57 = vsel %vm252_vm8, %v491_v18, %v251_v54 }
 0x121   :  { %v256_v59 = vsel %vm254_vm9, %v255_v55, %v253_v57  ;;  %v288_v60 = vsel %vm287_vm10, %v493_v19, %v286_v56  ;;  %v379_v62 = vpop.eup %378 }
 0x122   :  { %301 = vst [vmem:[#allocation7 + $0x10] sm:$0xff] %v256_v59  ;;  %v291_v61 = vsel %vm289_vm11, %v290_v58, %v288_v60  ;;  %v381_v63 = vpop.eup %380  ;;  %v258_v0 = vmul.f32 %v379_v62, %v497_v31 }
 0x123   :  { %306 = vst [vmem:[#allocation7 + $0x38] sm:$0xff] %v291_v61  ;;  %v293_v2 = vmul.f32 %v381_v63, %v499_v32 }
 0x124   :  { %v260_v3 = vsel %vm259_vm12, %v497_v31, %v258_v0 }
 0x125   :  { %v263_v5 = vsel %vm261_vm13, %v262_v1, %v260_v3  ;;  %v295_v6 = vsel %vm294_vm14, %v499_v32, %v293_v2  ;;  %v383_v7 = vpop.eup %382 }
 0x126   :  { %302 = vst [vmem:[#allocation7 + $0x18] sm:$0xff] %v263_v5  ;;  %v298_v8 = vsel %vm296_vm15, %v297_v4, %v295_v6  ;;  %v265_v9 = vmul.f32 %v383_v7, %v231_v42 }
 0x127   :  { %307 = vst [vmem:[#allocation7 + $0x40] sm:$0xff] %v298_v8 }
 0x128   :  { %v267_v11 = vsel %vm266_vm0, %v231_v42, %v265_v9 }
 0x129   :  { %v270_v12 = vsel %vm268_vm1, %v269_v10, %v267_v11 }
 0x12a   :  { %303 = vst [vmem:[#allocation7 + $0x20] sm:$0xff] %v270_v12 }
 0x12b   :  { %435 = shalt.err (!%p432_p0)
}
 0x12c   :  { %319 = dma.vmem_to_hbm [thread:$0]  %s314_s1, 1152, %s531_s2, [#allocation4], %s451_s12, %s451_s12, %s452_s13  }
 0x12d   :  { %448 = dma.done.wait [#allocation4], 1152  }
 0x12e   :  { %449 = vsyncadd [#allocation4], 4294966144 }
 0x12f   :  { %323 = vsyncpa [#allocation3], 1 }
 0x130   :  { %324 = vsyncpa [#allocation6], 1 }
 0x131   :  { %325 = vsyncpa [#allocation4], 1 }

</bundles_post_ra>
